<compile_context>
chip_gen: v5e
topology: v5e:2x2
jax: 0.10.0
libtpu: 0.0.40
codegen_flags: <defaults>
</compile_context>

<pallas_src>
import math

import jax
import jax.numpy as jnp
from jax.experimental import pallas as pl
from jax.experimental.pallas import tpu as pltpu

_INV_SQRT2 = 1.0 / math.sqrt(2.0)


# --------------------------------------------------------------------------
# Kernels
# --------------------------------------------------------------------------
def _mlp_kernel_fused(x_ref, w1_ref, b1_ref, w2_ref, b2_ref, o_ref):
    """Whole hidden dim in one shot: out = GELU(x @ W1 + b1) @ W2 + b2."""
    x = x_ref[...].astype(w1_ref.dtype)                       # in-kernel cast
    h = jnp.dot(x, w1_ref[...], preferred_element_type=jnp.float32)
    h = h + b1_ref[...]
    # Exact erf-based GELU (matches torch.nn.GELU default), computed in f32.
    h = 0.5 * h * (1.0 + jax.lax.erf(h * _INV_SQRT2))
    out = jnp.dot(h.astype(w2_ref.dtype), w2_ref[...],
                  preferred_element_type=jnp.float32)
    # Dropout with p=0.0 is identity -> nothing extra to do.
    o_ref[...] = (out + b2_ref[...]).astype(o_ref.dtype)


def _mlp_kernel_acc(x_ref, w1_ref, b1_ref, w2_ref, b2_ref, o_ref, acc_ref):
    """Hidden dim split into blocks (grid axis 1, reduction): accumulate fc2."""
    h_idx = pl.program_id(1)

    @pl.when(h_idx == 0)
    def _():
        acc_ref[...] = jnp.zeros_like(acc_ref)

    x = x_ref[...].astype(w1_ref.dtype)                       # in-kernel cast
    h = jnp.dot(x, w1_ref[...], preferred_element_type=jnp.float32)
    h = h + b1_ref[...]
    h = 0.5 * h * (1.0 + jax.lax.erf(h * _INV_SQRT2))
    acc_ref[...] += jnp.dot(h.astype(w2_ref.dtype), w2_ref[...],
                            preferred_element_type=jnp.float32)

    @pl.when(h_idx == pl.num_programs(1) - 1)
    def _():
        o_ref[...] = (acc_ref[...] + b2_ref[...]).astype(o_ref.dtype)


# --------------------------------------------------------------------------
# Wrapper
# --------------------------------------------------------------------------
def _round_up(x, m):
    return (x + m - 1) // m * m


def _vmem_capacity_bytes():
    """Per-core VMEM capacity (128 MiB v5e/v6e, 64 MiB v7x); safe fallback."""
    try:
        info = pltpu.get_tpu_info()
        cap = getattr(info, "vmem_capacity_bytes", None)
        if cap:
            return int(cap)
    except Exception:
        pass
    return 128 << 20


def _aligned_divisors_desc(n, align):
    return [c for c in range(n, 0, -1) if n % c == 0 and c % align == 0]


def mlp_pallas(x, w1, b1, w2, b2, *, tm=256, th=None):
    """ViT MLP forward: GELU(x @ W1 + b1) @ W2 + b2   (dropout p=0 -> identity).

    x  : (n_samples, seq, in_features)            -- any float dtype
    w1 : (in_features, hidden_features)           -- transposed vs torch Linear.weight;
    b1 : (hidden_features,)                          store as bf16 once at init for MXU
    w2 : (hidden_features, out_features)
    b2 : (out_features,)
    """
    n, s, d_in = x.shape
    d_hidden = w1.shape[1]
    d_out = w2.shape[1]
    out_dtype = x.dtype

    x_bytes = jnp.dtype(x.dtype).itemsize
    w_bytes = jnp.dtype(w1.dtype).itemsize
    out_bytes = jnp.dtype(out_dtype).itemsize
    f32b = 4

    # ---- VMEM budget (per-generation) --------------------------------------
    vmem_cap = _vmem_capacity_bytes()            # 64 MiB/TC on v7x, 128 MiB else
    budget = int(vmem_cap * 0.75)                # ~48 MiB v7x, ~96 MiB v5e/v6e

    def est_vmem(tm_, th_, n_h_):
        b = (2 * tm_ * d_in * x_bytes            # x tile (double-buffered)
             + 2 * d_in * th_ * w_bytes          # W1 block
             + 2 * th_ * d_out * w_bytes         # W2 block
             + 2 * 8 * th_ * f32b                # b1 block (sublane padded)
             + 2 * 8 * d_out * f32b              # b2
             + 2 * tm_ * d_out * out_bytes       # output tile
             + tm_ * th_ * f32b                  # fc1/GELU f32 intermediate
             + tm_ * d_in * w_bytes              # x cast temp
             + tm_ * th_ * w_bytes)              # GELU cast temp
        if n_h_ > 1:
            b += tm_ * d_out * f32b              # f32 accumulator scratch
        return b

    # ---- token tile -------------------------------------------------------
    m = n * s
    tm = max(16, _round_up(tm, 16))              # 16-aligned (bf16 sublane pack)
    tm = min(tm, _round_up(m, 16))               # don't over-tile tiny inputs

    # ---- hidden block: prefer full hidden dim (weights resident) -----------
    if th is None:
        if est_vmem(tm, d_hidden, 1) <= budget:
            th = d_hidden                        # W1/W2 fetched once, held resident
        else:
            # Streamed weights: raise tm to amortize weight re-streaming.
            tm_big = min(max(tm, 512), _round_up(m, 16))
            # 256-aligned first (v6e/v7x MXU is 2x256x256), 128-aligned fallback (v5e).
            cands = (_aligned_divisors_desc(d_hidden, 256)
                     + [c for c in _aligned_divisors_desc(d_hidden, 128)
                        if c % 256 != 0])
            chosen = None
            for tm_try in ([tm_big, tm] if tm_big != tm else [tm]):
                for c in cands:
                    if est_vmem(tm_try, c, d_hidden // c) <= budget:
                        chosen = (tm_try, c)
                        break
                if chosen is not None:
                    break
            if chosen is None:                   # last resort: smallest aligned block
                chosen = (tm, cands[-1] if cands else d_hidden)
            tm, th = chosen
    assert d_hidden % th == 0, "hidden block must divide hidden_features"
    assert th == d_hidden or th % 128 == 0, "hidden block must be 128-aligned"

    # ---- keep grid[0] >= 2 so v7x megacore shards the parallel axis ---------
    m_pad = _round_up(m, tm)
    if m >= 256:
        while m_pad // tm < 2 and tm > 128:
            tm = max(128, _round_up(tm // 2, 16))
            m_pad = _round_up(m, tm)

    n_m_tiles = m_pad // tm
    n_h_blocks = d_hidden // th

    # ---- operand prep (no per-call weight casts; biases are tiny) ----------
    x2d = x.reshape(m, d_in)
    if m_pad != m:
        x2d = jnp.pad(x2d, ((0, m_pad - m), (0, 0)))
    b1_2d = b1.reshape(1, d_hidden).astype(jnp.float32)
    b2_2d = b2.reshape(1, d_out).astype(jnp.float32)

    # ---- VMEM limit (capped below physical per-core VMEM) ------------------
    vmem_bytes = est_vmem(tm, th, n_h_blocks)
    vmem_limit = int(min(max(int(1.25 * vmem_bytes) + (4 << 20), 32 << 20),
                         vmem_cap - (8 << 20)))  # ~56 MiB on v7x, ~120 MiB else

    # ---- cost hint: count re-streamed weights honestly ---------------------
    w_streams = n_m_tiles if n_h_blocks > 1 else 1
    cost = pl.CostEstimate(
        flops=2 * m_pad * (d_in * d_hidden + d_hidden * d_out),
        transcendentals=m_pad * d_hidden,
        bytes_accessed=(m_pad * d_in * x_bytes
                        + w_streams * (w1.size + w2.size) * w_bytes
                        + b1_2d.size * f32b + b2_2d.size * f32b
                        + m_pad * d_out * out_bytes),
    )

    if n_h_blocks == 1:
        # Resident weights, single pass over the hidden dim, no accumulator.
        grid_spec = pltpu.PrefetchScalarGridSpec(
            num_scalar_prefetch=0,
            grid=(n_m_tiles,),
            in_specs=[
                pl.BlockSpec((tm, d_in), lambda i: (i, 0)),          # x tile
                pl.BlockSpec((d_in, d_hidden), lambda i: (0, 0)),    # W1 (resident)
                pl.BlockSpec((1, d_hidden), lambda i: (0, 0)),       # b1
                pl.BlockSpec((d_hidden, d_out), lambda i: (0, 0)),   # W2 (resident)
                pl.BlockSpec((1, d_out), lambda i: (0, 0)),          # b2
            ],
            out_specs=pl.BlockSpec((tm, d_out), lambda i: (i, 0)),
            scratch_shapes=[],
        )
        kernel = _mlp_kernel_fused
        dim_sem = ("parallel",)
    else:
        # Hidden dim streamed as a reduction axis; f32 accumulator in VMEM.
        # TODO(synk): if a profile shows exposed weight DMA here, sweep
        # pipeline_mode=pl.Buffered(3) on the W1/W2 specs (re-check VMEM first).
        grid_spec = pltpu.PrefetchScalarGridSpec(
            num_scalar_prefetch=0,
            grid=(n_m_tiles, n_h_blocks),
            in_specs=[
                pl.BlockSpec((tm, d_in), lambda i, h: (i, 0)),       # x tile
                pl.BlockSpec((d_in, th), lambda i, h: (0, h)),       # W1 hidden blk
                pl.BlockSpec((1, th), lambda i, h: (0, h)),          # b1 hidden blk
                pl.BlockSpec((th, d_out), lambda i, h: (h, 0)),      # W2 hidden blk
                pl.BlockSpec((1, d_out), lambda i, h: (0, 0)),       # b2
            ],
            out_specs=pl.BlockSpec((tm, d_out), lambda i, h: (i, 0)),
            scratch_shapes=[pltpu.VMEM((tm, d_out), jnp.float32)],
        )
        kernel = _mlp_kernel_acc
        dim_sem = ("parallel", "arbitrary")

    out2d = pl.pallas_call(
        kernel,
        out_shape=jax.ShapeDtypeStruct((m_pad, d_out), out_dtype),
        grid_spec=grid_spec,
        compiler_params=pltpu.CompilerParams(
            dimension_semantics=dim_sem,
            vmem_limit_bytes=vmem_limit,
        ),
        cost_estimate=cost,
    )(x2d, w1, b1_2d, w2, b2_2d)

    return out2d[:m].reshape(n, s, d_out)


# --------------------------------------------------------------------------
# Init + reference + smoke test
# --------------------------------------------------------------------------
def _init_linear(key, fan_in, fan_out):
    """torch.nn.Linear-style init (uniform +/- 1/sqrt(fan_in)); returns
    W of shape (fan_in, fan_out) (transposed vs. PyTorch) and b (fan_out,).
    Weights are cast to bf16 ONCE here (MXU-native), mirroring the
    store-weights-as-bf16-at-init recommendation."""
    kw, kb = jax.random.split(key)
    bound = 1.0 / math.sqrt(fan_in)
    w = jax.random.uniform(kw, (fan_in, fan_out), jnp.float32,
                           minval=-bound, maxval=bound)
    b = jax.random.uniform(kb, (fan_out,), jnp.float32,
                           minval=-bound, maxval=bound)
    return w.astype(jnp.bfloat16), b


def _mlp_ref(x, w1, b1, w2, b2):
    """Reference mirroring the kernel's dtype handling (bf16 MXU inputs,
    f32 accumulation, exact erf GELU in f32)."""
    f32 = jnp.float32
    xc = x.astype(w1.dtype).astype(f32)
    w1f = w1.astype(f32)
    w2f = w2.astype(f32)
    h = xc @ w1f + b1.astype(f32)
    h = 0.5 * h * (1.0 + jax.lax.erf(h * _INV_SQRT2))
    hc = h.astype(w2.dtype).astype(f32)
    return (hc @ w2f + b2.astype(f32)).astype(x.dtype)


if __name__ == "__main__":
    key = jax.random.PRNGKey(0)
    k_x, k_fc1, k_fc2 = jax.random.split(key, 3)

    # Small, lane-aligned shapes consistent with the module's forward:
    # (n_samples, n_patches + 1, in_features).
    n_samples, seq = 2, 8
    in_features, hidden_features, out_features = 128, 256, 128

    x = jax.random.normal(k_x, (n_samples, seq, in_features), jnp.float32)
    w1, b1 = _init_linear(k_fc1, in_features, hidden_features)
    w2, b2 = _init_linear(k_fc2, hidden_features, out_features)

    out = mlp_pallas(x, w1, b1, w2, b2)
    out = jax.block_until_ready(out)

    ref = _mlp_ref(x, w1, b1, w2, b2)
    assert out.shape == (n_samples, seq, out_features)
    assert jnp.allclose(out, ref, atol=2e-2, rtol=2e-2), "mismatch vs reference"

    print("KERNEL_OK")
</pallas_src>

<mosaic_0001>
module attributes {stable_mosaic.version = 11 : i64} {
  func.func @_mlp_kernel_fused(%arg0: i32, %arg1: memref<16x128xf32, #tpu.memory_space<vmem>>, %arg2: memref<128x256xbf16, #tpu.memory_space<vmem>>, %arg3: memref<1x256xf32, #tpu.memory_space<vmem>>, %arg4: memref<256x128xbf16, #tpu.memory_space<vmem>>, %arg5: memref<1x128xf32, #tpu.memory_space<vmem>>, %arg6: memref<16x128xf32, #tpu.memory_space<vmem>>) attributes {dimension_semantics = [#tpu.dimension_semantics<parallel>], iteration_bounds = array<i64: 1>, scalar_prefetch = 0 : i64, scratch_operands = 0 : i64, tpu.core_type = #tpu.core_type<tc>, window_params = [{transform_indices = @transform_0, window_bounds = array<i64: 16, 128>}, {pipeline_mode = #tpu.pipeline_mode<synchronous>, transform_indices = @transform_1, window_bounds = array<i64: 128, 256>}, {pipeline_mode = #tpu.pipeline_mode<synchronous>, transform_indices = @transform_2, window_bounds = array<i64: 1, 256>}, {pipeline_mode = #tpu.pipeline_mode<synchronous>, transform_indices = @transform_3, window_bounds = array<i64: 256, 128>}, {pipeline_mode = #tpu.pipeline_mode<synchronous>, transform_indices = @transform_4, window_bounds = array<i64: 1, 128>}, {transform_indices = @transform_5, window_bounds = array<i64: 16, 128>}]} {
    %c0 = arith.constant 0 : index
    %c0_0 = arith.constant 0 : index
    %0 = vector.load %arg1[%c0, %c0_0] : memref<16x128xf32, #tpu.memory_space<vmem>>, vector<16x128xf32>
    %1 = arith.truncf %0 : vector<16x128xf32> to vector<16x128xbf16>
    %c0_1 = arith.constant 0 : index
    %c0_2 = arith.constant 0 : index
    %2 = vector.load %arg2[%c0_1, %c0_2] : memref<128x256xbf16, #tpu.memory_space<vmem>>, vector<128x256xbf16>
    %cst = arith.constant dense<0.000000e+00> : vector<16x256xf32>
    %3 = tpu.matmul %1, %2, %cst {dimension_numbers = #tpu.dot_dimension_numbers<[1], [0], [0], [1], [0, 0, 1, 1], [], []>} : vector<16x128xbf16>, vector<128x256xbf16>, vector<16x256xf32> -> vector<16x256xf32>
    %c0_3 = arith.constant 0 : index
    %c0_4 = arith.constant 0 : index
    %4 = vector.load %arg3[%c0_3, %c0_4] : memref<1x256xf32, #tpu.memory_space<vmem>>, vector<1x256xf32>
    %5 = vector.broadcast %4 : vector<1x256xf32> to vector<16x256xf32>
    %6 = arith.addf %3, %5 : vector<16x256xf32>
    %cst_5 = arith.constant 5.000000e-01 : f32
    %7 = vector.broadcast %cst_5 : f32 to vector<16x256xf32>
    %8 = arith.mulf %7, %6 : vector<16x256xf32>
    %cst_6 = arith.constant 0.707106769 : f32
    %9 = vector.broadcast %cst_6 : f32 to vector<16x256xf32>
    %10 = arith.mulf %6, %9 : vector<16x256xf32>
    %11 = math.erf %10 : vector<16x256xf32>
    %cst_7 = arith.constant 1.000000e+00 : f32
    %12 = vector.broadcast %cst_7 : f32 to vector<16x256xf32>
    %13 = arith.addf %12, %11 : vector<16x256xf32>
    %14 = arith.mulf %8, %13 : vector<16x256xf32>
    %15 = arith.truncf %14 : vector<16x256xf32> to vector<16x256xbf16>
    %c0_8 = arith.constant 0 : index
    %c0_9 = arith.constant 0 : index
    %16 = vector.load %arg4[%c0_8, %c0_9] : memref<256x128xbf16, #tpu.memory_space<vmem>>, vector<256x128xbf16>
    %cst_10 = arith.constant dense<0.000000e+00> : vector<16x128xf32>
    %17 = tpu.matmul %15, %16, %cst_10 {dimension_numbers = #tpu.dot_dimension_numbers<[1], [0], [0], [1], [0, 0, 1, 1], [], []>} : vector<16x256xbf16>, vector<256x128xbf16>, vector<16x128xf32> -> vector<16x128xf32>
    %c0_11 = arith.constant 0 : index
    %c0_12 = arith.constant 0 : index
    %18 = vector.load %arg5[%c0_11, %c0_12] : memref<1x128xf32, #tpu.memory_space<vmem>>, vector<1x128xf32>
    %19 = vector.broadcast %18 : vector<1x128xf32> to vector<16x128xf32>
    %20 = arith.addf %17, %19 : vector<16x128xf32>
    %c0_13 = arith.constant 0 : index
    %c0_14 = arith.constant 0 : index
    %21 = vector.load %arg6[%c0_13, %c0_14] : memref<16x128xf32, #tpu.memory_space<vmem>>, vector<16x128xf32>
    tpu.vector_store %arg6[%c0_13, %c0_14], %20 {strides = array<i32>} : memref<16x128xf32, #tpu.memory_space<vmem>>, vector<16x128xf32>,
    return
  }
  func.func @transform_0(%arg0: i32) -> (i32, i32) {
    %c0_i32 = arith.constant 0 : i32
    %c0_i32_0 = arith.constant 0 : i32
    return %arg0, %c0_i32 : i32, i32
  }
  func.func @transform_1(%arg0: i32) -> (i32, i32) {
    %c0_i32 = arith.constant 0 : i32
    %c0_i32_0 = arith.constant 0 : i32
    %c0_i32_1 = arith.constant 0 : i32
    return %c0_i32, %c0_i32_0 : i32, i32
  }
  func.func @transform_2(%arg0: i32) -> (i32, i32) {
    %c0_i32 = arith.constant 0 : i32
    %c0_i32_0 = arith.constant 0 : i32
    %c0_i32_1 = arith.constant 0 : i32
    return %c0_i32, %c0_i32_0 : i32, i32
  }
  func.func @transform_3(%arg0: i32) -> (i32, i32) {
    %c0_i32 = arith.constant 0 : i32
    %c0_i32_0 = arith.constant 0 : i32
    %c0_i32_1 = arith.constant 0 : i32
    return %c0_i32, %c0_i32_0 : i32, i32
  }
  func.func @transform_4(%arg0: i32) -> (i32, i32) {
    %c0_i32 = arith.constant 0 : i32
    %c0_i32_0 = arith.constant 0 : i32
    %c0_i32_1 = arith.constant 0 : i32
    return %c0_i32, %c0_i32_0 : i32, i32
  }
  func.func @transform_5(%arg0: i32) -> (i32, i32) {
    %c0_i32 = arith.constant 0 : i32
    %c0_i32_0 = arith.constant 0 : i32
    return %arg0, %c0_i32 : i32, i32
  }
}

</mosaic_0001>

<bundles_post_ra>
// kernel: tpu_custom_call.1
= control target key start
LH: loop header
LB: loop body
LE: loop exit
PB: predicated region body
PF: predicated region fallthrough
CT: control target
= control target key end

     0   :  { %10 = vsyncpa [#allocation3], 0  ;;  %s1043_s0 = inlined_call_operand.hbm [shape: f32[16,128], index: 0, kind: input, shape index: {}]   ;;  %s1044_s1 = inlined_call_operand.hbm [shape: bf16[128,256], index: 1, kind: input, shape index: {}]   ;;  %s1045_s2 = inlined_call_operand.hbm [shape: f32[1,256], index: 2, kind: input, shape index: {}]   ;;  %s1046_s3 = inlined_call_operand.hbm [shape: bf16[256,128], index: 3, kind: input, shape index: {}]   ;;  %s1047_s4 = inlined_call_operand.vmem [shape: f32[1,128], index: 4, kind: input, shape index: {}]   ;;  %s1048_s5 = inlined_call_operand.hbm [shape: f32[16,128], index: 5, kind: output, shape index: {}]  }
   0x1   :  { %11 = vsyncpa [#allocation6], 0 }
   0x2   :  { %12 = vsyncpa [#allocation9], 0 }
   0x3   :  { %13 = vsyncpa [#allocation4], 0  ;;  %s31_s20 = sshll.u32 %s1044_s1, 4  ;;  %s886_s21 = smov [#allocation5]   ;;  %s32_s20 = int_to_ptr.hbm [resolvable:$true] %s31_s20 }
   0x4   :  { %s33_s22 = sshll.u32 %s886_s21, 4  ;;  %s18_s25 = sshll.u32 %s1043_s0, 4  ;;  %s34_s22 = int_to_ptr.vmem [resolvable:$true] %s33_s22  ;;  %s19_s25 = int_to_ptr.hbm [resolvable:$true] %s18_s25 }
   0x5   :  { %s887_s26 = smov 128   ;;  %s888_s27 = smov 8  }
   0x6   :  { %39 = dma.hbm_to_vmem [thread:$0]  %s32_s20, 2048, %s34_s22, [#allocation6], %s887_s26, %s887_s26, %s888_s27  }
   0x7   :  { %s889_s28 = smov [#allocation2]   ;;  %s45_s1 = sshll.u32 %s1045_s2, 4  ;;  %s46_s1 = int_to_ptr.hbm [resolvable:$true] %s45_s1 }
   0x8   :  { %s20_s29 = sshll.u32 %s889_s28, 4  ;;  %s55_s8 = sshll.u32 %s1046_s3, 4  ;;  %s21_s29 = int_to_ptr.vmem [resolvable:$true] %s20_s29  ;;  %s56_s8 = int_to_ptr.hbm [resolvable:$true] %s55_s8 }
   0x9   :  { %26 = dma.hbm_to_vmem [thread:$0]  %s19_s25, 256, %s21_s29, [#allocation3], %s887_s26, %s887_s26, %s888_s27  }
   0xa   :  { %s890_s9 = smov [#allocation7]   ;;  %s891_s11 = smov [#allocation8]  }
   0xb   :  { %s47_s10 = sshll.u32 %s890_s9, 4  ;;  %s57_s12 = sshll.u32 %s891_s11, 4  ;;  %s48_s10 = int_to_ptr.vmem [resolvable:$true] %s47_s10  ;;  %s58_s12 = int_to_ptr.vmem [resolvable:$true] %s57_s12 }
   0xc   :  { %50 = dma.hbm_to_vmem [thread:$0]  %s46_s1, 32, %s48_s10, [#allocation6]  }
   0xd   :  { %s892_s13 = smov 64   ;;  %s893_s2 = smov 4  }
   0xe   :  { %63 = dma.hbm_to_vmem [thread:$0]  %s56_s8, 2048, %s58_s12, [#allocation9], %s892_s13, %s892_s13, %s893_s2  }
   0xf   :  { %878 = dma.done.wait [#allocation3], 256  }
  0x10   :  { %879 = vsyncadd [#allocation3], 4294967040 }
  0x11   :  { %880 = dma.done.wait [#allocation6], 2080  }
  0x12   :  { %881 = vsyncadd [#allocation6], 4294965216 }
  0x13   :  { %882 = dma.done.wait [#allocation9], 2048  }
  0x14   :  { %883 = vsyncadd [#allocation9], 4294965248  ;;  %v634_v0 = vld [vmem:[#allocation5 + $0x70] sm:$0xf]  ;;  %v723_v1 = vld [vmem:[#allocation5 + $0x74] sm:$0xf0] }
  0x15   :  { %v722_v2 = vld [vmem:[#allocation5 + $0x74] sm:$0xf]  ;;  %v635_v3 = vor.u32 %v723_v1, %v634_v0  ;;  %v636_v4 = vld [vmem:[#allocation5 + $0x78] sm:$0xf0]  ;;  %v626_v5 = vld [vmem:[#allocation5 + $0x60] sm:$0xf] }
  0x16   :  { %v721_v6 = vld [vmem:[#allocation5 + $0x64] sm:$0xf0]  ;;  %v639_v7 = vor.u32 %v722_v2, %v636_v4  ;;  %v720_v8 = vld [vmem:[#allocation5 + $0x64] sm:$0xf]  ;;  %v628_v9 = vld [vmem:[#allocation5 + $0x68] sm:$0xf0] }
  0x17   :  { %187 = vmatpush.bf16.msra.mxu0 %v635_v3  ;;  %v627_v10 = vor.u32 %v721_v6, %v626_v5  ;;  %v631_v11 = vor.u32 %v720_v8, %v628_v9  ;;  %v618_v12 = vld [vmem:[#allocation5 + $0x50] sm:$0xf]  ;;  %v719_v13 = vld [vmem:[#allocation5 + $0x54] sm:$0xf0]  ;;  %v718_v14 = vld [vmem:[#allocation5 + $0x54] sm:$0xf] }
  0x18   :  { %201 = vmatpush.bf16.msra.mxu1 %v639_v7  ;;  %v620_v15 = vld [vmem:[#allocation5 + $0x58] sm:$0xf0]  ;;  %v619_v16 = vor.u32 %v719_v13, %v618_v12  ;;  %v610_v18 = vld [vmem:[#allocation5 + $0x40] sm:$0xf]  ;;  %v717_v19 = vld [vmem:[#allocation5 + $0x44] sm:$0xf0] }
  0x19   :  { %v623_v17 = vor.u32 %v718_v14, %v620_v15  ;;  %v716_v20 = vld [vmem:[#allocation5 + $0x44] sm:$0xf]  ;;  %v612_v21 = vld [vmem:[#allocation5 + $0x48] sm:$0xf0]  ;;  %v611_v22 = vor.u32 %v717_v19, %v610_v18  ;;  %v602_v24 = vld [vmem:[#allocation5 + $0x30] sm:$0xf] }
  0x1a   :  { %v615_v23 = vor.u32 %v716_v20, %v612_v21  ;;  %v715_v25 = vld [vmem:[#allocation5 + $0x34] sm:$0xf0]  ;;  %v714_v26 = vld [vmem:[#allocation5 + $0x34] sm:$0xf]  ;;  %v604_v27 = vld [vmem:[#allocation5 + $0x38] sm:$0xf0] }
  0x1b   :  { %188 = vmatpush.bf16.msra.mxu0 %v627_v10  ;;  %v603_v28 = vor.u32 %v715_v25, %v602_v24  ;;  %v607_v29 = vor.u32 %v714_v26, %v604_v27  ;;  %v594_v30 = vld [vmem:[#allocation5 + $0x20] sm:$0xf]  ;;  %v713_v31 = vld [vmem:[#allocation5 + $0x24] sm:$0xf0]  ;;  %v712_v32 = vld [vmem:[#allocation5 + $0x24] sm:$0xf] }
  0x1c   :  { %202 = vmatpush.bf16.msra.mxu1 %v631_v11  ;;  %v596_v33 = vld [vmem:[#allocation5 + $0x28] sm:$0xf0]  ;;  %v595_v34 = vor.u32 %v713_v31, %v594_v30  ;;  %v586_v36 = vld [vmem:[#allocation5 + $0x10] sm:$0xf]  ;;  %v711_v37 = vld [vmem:[#allocation5 + $0x14] sm:$0xf0] }
  0x1d   :  { %v599_v35 = vor.u32 %v712_v32, %v596_v33  ;;  %v710_v38 = vld [vmem:[#allocation5 + $0x14] sm:$0xf]  ;;  %v588_v39 = vld [vmem:[#allocation5 + $0x18] sm:$0xf0]  ;;  %v587_v40 = vor.u32 %v711_v37, %v586_v36  ;;  %v578_v42 = vld [vmem:[#allocation5] sm:$0xf] }
  0x1e   :  { %v591_v41 = vor.u32 %v710_v38, %v588_v39  ;;  %v709_v43 = vld [vmem:[#allocation5 + $0x4] sm:$0xf0]  ;;  %v708_v44 = vld [vmem:[#allocation5 + $0x4] sm:$0xf]  ;;  %v580_v45 = vld [vmem:[#allocation5 + $0x8] sm:$0xf0] }
  0x1f   :  { %189 = vmatpush.bf16.msra.mxu0 %v619_v16  ;;  %v579_v46 = vor.u32 %v709_v43, %v578_v42  ;;  %v82_v47 = vld [vmem:[#allocation2] sm:$0xff]  ;;  %v83_v48 = vld [vmem:[#allocation2 + $0x8] sm:$0xff]  ;;  %v583_v49 = vor.u32 %v708_v44, %v580_v45  ;;  %v101_v51 = vld [vmem:[#allocation7] sm:$0x3]  ;;  %s894_s15 = smov [#allocation10]   ;;  %s561_s19 = sshll.u32 %s1048_s5, 4  ;;  %s562_s19 = int_to_ptr.hbm [resolvable:$true] %s561_s19 }
  0x20   :  { %203 = vmatpush.bf16.msra.mxu1 %v623_v17  ;;  %v84_v50 = vpack.c.bf16 %v83_v48, %v82_v47  ;;  %v103_v52 = vperm.slane %v101_v51, 0  ;;  %v104_v53 = vperm.slane %v101_v51, 1  ;;  %v731_v55 = vld [vmem:[#allocation8 + $0x38] sm:$0xff]  ;;  %v730_v62 = vld [vmem:[#allocation8 + $0x30] sm:$0xff]  ;;  %v729_v2 = vld [vmem:[#allocation8 + $0x28] sm:$0xff]  ;;  %s559_s16 = sshll.u32 %s894_s15, 4  ;;  %s560_s16 = int_to_ptr.vmem [resolvable:$true] %s559_s16 }
  0x21   :  { %v739_v56 = vld [vmem:[#allocation8 + $0x78] sm:$0xff]  ;;  %525 = vmatpush.bf16.msra.mxu2 %v731_v55  ;;  %v738_v63 = vld [vmem:[#allocation8 + $0x70] sm:$0xff]  ;;  %v737_v3 = vld [vmem:[#allocation8 + $0x68] sm:$0xff] }
  0x22   :  { %539 = vmatpush.bf16.msra.mxu3 %v739_v56  ;;  %v728_v10 = vld [vmem:[#allocation8 + $0x20] sm:$0xff]  ;;  %v727_v26 = vld [vmem:[#allocation8 + $0x18] sm:$0xff]  ;;  %v733_v55 = vld [vmem:[#allocation8 + $0x48] sm:$0xff] }
  0x23   :  { %190 = vmatpush.bf16.msra.mxu0 %v611_v22  ;;  %v736_v11 = vld [vmem:[#allocation8 + $0x60] sm:$0xff]  ;;  %v735_v27 = vld [vmem:[#allocation8 + $0x58] sm:$0xff] }
  0x24   :  { %204 = vmatpush.bf16.msra.mxu1 %v615_v23 }
  0x25   :  { %526 = vmatpush.bf16.msra.mxu2 %v730_v62 }
  0x26   :  { %540 = vmatpush.bf16.msra.mxu3 %v738_v63 }
  0x27   :  { %191 = vmatpush.bf16.msra.mxu0 %v603_v28 }
  0x28   :  { %205 = vmatpush.bf16.msra.mxu1 %v607_v29 }
  0x29   :  { %527 = vmatpush.bf16.msra.mxu2 %v729_v2 }
  0x2a   :  { %541 = vmatpush.bf16.msra.mxu3 %v737_v3 }
  0x2b   :  { %192 = vmatpush.bf16.msra.mxu0 %v595_v34  ;;  %v726_v34 = vld [vmem:[#allocation8 + $0x10] sm:$0xff] }
  0x2c   :  { %206 = vmatpush.bf16.msra.mxu1 %v599_v35  ;;  %v734_v35 = vld [vmem:[#allocation8 + $0x50] sm:$0xff] }
  0x2d   :  { %528 = vmatpush.bf16.msra.mxu2 %v728_v10 }
  0x2e   :  { %542 = vmatpush.bf16.msra.mxu3 %v736_v11  ;;  %v724_v11 = vld [vmem:[#allocation8] sm:$0xff] }
  0x2f   :  { %193 = vmatpush.bf16.msra.mxu0 %v587_v40 }
  0x30   :  { %207 = vmatpush.bf16.msra.mxu1 %v591_v41 }
  0x31   :  { %529 = vmatpush.bf16.msra.mxu2 %v727_v26 }
  0x32   :  { %543 = vmatpush.bf16.msra.mxu3 %v735_v27 }
  0x33   :  { %194 = vmatpush.bf16.msra.mxu0 %v579_v46 }
  0x34   :  { %208 = vmatpush.bf16.msra.mxu1 %v583_v49 }
  0x35   :  { %530 = vmatpush.bf16.msra.mxu2 %v726_v34 }
  0x36   :  { %195 = vmatmul.bf16.vlgmr.msra.gmra.mxu0 %v84_v50  ;;  %544 = vmatpush.bf16.msra.mxu3 %v734_v35 }
  0x37   :  { %209 = vmatmul.bf16.vlgmr.msra.gmra.mxu1 %v84_v50 }
  0x3a   :  { %545 = vmatpush.bf16.msra.mxu3 %v733_v55 }
  0xb3   :  { %v196_v54 = vpop.f32.mrf.mxu0 }
  0xb4   :  { %v943_v57 = vadd.f32 %v196_v54, %v103_v52  ;;  %v210_v58 = vpop.f32.mrf.mxu1  ;;  %v725_v54 = vld [vmem:[#allocation8 + $0x8] sm:$0xff] }
  0xb5   :  { %v945_v59 = vadd.f32 %v210_v58, %v104_v53  ;;  %531 = vmatpush.bf16.msra.mxu2 %v725_v54 }
  0xb6   :  { %v948_v60 = vmul.f32 0.70710677, %v943_v57 }
  0xb7   :  { %v951_v61 = vmul.f32 0.70710677, %v945_v59 }
  0xb8   :  { %v223_v0 = vmul.f32 %v948_v60, %v948_v60 }
  0xb9   :  { %v263_v1 = vmul.f32 %v951_v61, %v951_v61  ;;  %532 = vmatpush.bf16.msra.mxu2 %v724_v11 }
  0xba   :  { %v957_v4 = vmin.f32 %v223_v0, 16.0 }
  0xbb   :  { %v959_v5 = vmin.f32 %v263_v1, 16.0  ;;  %v198_v6 = vpop.f32.mrf.mxu0 }
  0xbc   :  { %v225_v7 = vmul.f32 2.1237322e-06, %v957_v4  ;;  %v962_v8 = vadd.f32 %v198_v6, %v103_v52  ;;  %v212_v9 = vpop.f32.mrf.mxu1  ;;  %v236_v14 = vmul.f32 3.8918573e-05, %v957_v4 }
  0xbd   :  { %v265_v12 = vmul.f32 2.1237322e-06, %v959_v5  ;;  %v965_v13 = vadd.f32 %v212_v9, %v104_v53  ;;  %v276_v15 = vmul.f32 3.8918573e-05, %v959_v5 }
  0xbe   :  { %v226_v16 = vadd.f32 0.00028619796, %v225_v7  ;;  %v970_v17 = vmul.f32 0.70710677, %v962_v8  ;;  %v237_v22 = vadd.f32 0.001143296, %v236_v14 }
  0xbf   :  { %v266_v18 = vadd.f32 0.00028619796, %v265_v12  ;;  %v973_v19 = vmul.f32 0.70710677, %v965_v13  ;;  %v277_v23 = vadd.f32 0.001143296, %v276_v15 }
  0xc0   :  { %v227_v20 = vmul.f32 %v226_v16, %v957_v4  ;;  %v303_v21 = vmul.f32 %v970_v17, %v970_v17  ;;  %v238_v30 = vmul.f32 %v237_v22, %v957_v4  ;;  %v732_v12 = vld [vmem:[#allocation8 + $0x40] sm:$0xff] }
  0xc1   :  { %v267_v24 = vmul.f32 %v266_v18, %v959_v5  ;;  %v343_v25 = vmul.f32 %v973_v19, %v973_v19  ;;  %v278_v31 = vmul.f32 %v277_v23, %v959_v5  ;;  %546 = vmatpush.bf16.msra.mxu3 %v732_v12 }
  0xc2   :  { %v228_v28 = vadd.f32 0.0036580483, %v227_v20  ;;  %v981_v29 = vmin.f32 %v303_v21, 16.0  ;;  %v239_v37 = vadd.f32 0.014752088, %v238_v30 }
  0xc3   :  { %v268_v32 = vadd.f32 0.0036580483, %v267_v24  ;;  %v985_v33 = vmin.f32 %v343_v25, 16.0  ;;  %v279_v40 = vadd.f32 0.014752088, %v278_v31 }
  0xc4   :  { %v305_v36 = vmul.f32 2.1237322e-06, %v981_v29  ;;  %v316_v38 = vmul.f32 3.8918573e-05, %v981_v29  ;;  %v229_v42 = vmul.f32 %v228_v28, %v957_v4  ;;  %v240_v44 = vmul.f32 %v239_v37, %v957_v4 }
  0xc5   :  { %v345_v39 = vmul.f32 2.1237322e-06, %v985_v33  ;;  %v356_v41 = vmul.f32 3.8918573e-05, %v985_v33  ;;  %v280_v47 = vmul.f32 %v279_v40, %v959_v5  ;;  %v269_v52 = vmul.f32 %v268_v32, %v959_v5 }
  0xc6   :  { %v306_v43 = vadd.f32 0.00028619796, %v305_v36  ;;  %v317_v45 = vadd.f32 0.001143296, %v316_v38  ;;  %v241_v50 = vadd.f32 0.112945676, %v240_v44 }
  0xc7   :  { %v346_v46 = vadd.f32 0.00028619796, %v345_v39  ;;  %v357_v48 = vadd.f32 0.001143296, %v356_v41  ;;  %v281_v56 = vadd.f32 0.112945676, %v280_v47 }
  0xc8   :  { %v307_v49 = vmul.f32 %v306_v43, %v981_v29  ;;  %v318_v51 = vmul.f32 %v317_v45, %v981_v29  ;;  %v230_v62 = vadd.f32 0.05243302, %v229_v42  ;;  %v242_v0 = vmul.f32 %v241_v50, %v957_v4 }
  0xc9   :  { %v347_v53 = vmul.f32 %v346_v46, %v985_v33  ;;  %v358_v58 = vmul.f32 %v357_v48, %v985_v33  ;;  %v282_v2 = vmul.f32 %v281_v56, %v959_v5  ;;  %v270_v18 = vadd.f32 0.05243302, %v269_v52 }
  0xca   :  { %v308_v63 = vadd.f32 0.0036580483, %v307_v49  ;;  %v319_v1 = vadd.f32 0.014752088, %v318_v51  ;;  %v243_v9 = vadd.f32 0.4994258, %v242_v0  ;;  %v231_v16 = vmul.f32 %v230_v62, %v957_v4 }
  0xcb   :  { %v359_v3 = vadd.f32 0.014752088, %v358_v58  ;;  %v348_v7 = vadd.f32 0.0036580483, %v347_v53  ;;  %v283_v14 = vadd.f32 0.4994258, %v282_v2  ;;  %v271_v31 = vmul.f32 %v270_v18, %v959_v5 }
  0xcc   :  { %v309_v6 = vmul.f32 %v308_v63, %v981_v29  ;;  %v320_v10 = vmul.f32 %v319_v1, %v981_v29  ;;  %v244_v20 = vmul.f32 %v243_v9, %v957_v4  ;;  %v232_v30 = vadd.f32 0.18741608, %v231_v16 }
  0xcd   :  { %v360_v15 = vmul.f32 %v359_v3, %v985_v33  ;;  %v284_v22 = vmul.f32 %v283_v14, %v959_v5  ;;  %v349_v25 = vmul.f32 %v348_v7, %v985_v33  ;;  %v272_v39 = vadd.f32 0.18741608, %v271_v31 }
  0xce   :  { %v321_v21 = vadd.f32 0.112945676, %v320_v10  ;;  %v310_v24 = vadd.f32 0.05243302, %v309_v6  ;;  %v245_v26 = vadd.f32 1.0, %v244_v20  ;;  %v233_v38 = vmul.f32 %v232_v30, %v957_v4 }
  0xcf   :  { %v361_v23 = vadd.f32 0.112945676, %v360_v15  ;;  %v285_v28 = vadd.f32 1.0, %v284_v22  ;;  %v350_v36 = vadd.f32 0.05243302, %v349_v25  ;;  %v273_v49 = vmul.f32 %v272_v39, %v959_v5 }
  0xd0   :  { %v322_v27 = vmul.f32 %v321_v21, %v981_v29  ;;  %750 = vrcp.f32 %v245_v26  ;;  %v311_v35 = vmul.f32 %v310_v24, %v981_v29  ;;  %v234_v48 = vadd.f32 1.1283791, %v233_v38 }
  0xd1   :  { %v362_v32 = vmul.f32 %v361_v23, %v985_v33  ;;  %752 = vrcp.f32 %v285_v28  ;;  %v351_v44 = vmul.f32 %v350_v36, %v985_v33  ;;  %v255_v52 = vand.u32 2147483647, %v245_v26 }
  0xd2   :  { %v323_v34 = vadd.f32 0.4994258, %v322_v27  ;;  %v312_v43 = vadd.f32 0.18741608, %v311_v35  ;;  %v257_v55 = vand.u32 2147483648, %v245_v26  ;;  %v297_v62 = vand.u32 2147483648, %v285_v28 }
  0xd3   :  { %v363_v40 = vadd.f32 0.4994258, %v362_v32  ;;  %v352_v54 = vadd.f32 0.18741608, %v351_v44  ;;  %v235_v63 = vmul.f32 %v234_v48, %v948_v60  ;;  %v274_v0 = vadd.f32 1.1283791, %v273_v49 }
  0xd4   :  { %v324_v37 = vmul.f32 %v323_v34, %v981_v29  ;;  %v313_v4 = vmul.f32 %v312_v43, %v981_v29  ;;  %vm251_vm2 = vweird.f32 %v245_v26  ;;  %vm256_vm3 = vcmp.eq.f32.partialorder %v255_v52, 8.507059e+37 }
  0xd5   :  { %v364_v45 = vmul.f32 %v363_v40, %v985_v33  ;;  %v295_v3 = vand.u32 2147483647, %v285_v28  ;;  %v258_v29 = vor.u32 1.1754944e-38, %v257_v55  ;;  %vm291_vm5 = vweird.f32 %v285_v28 }
  0xd6   :  { %v325_v41 = vadd.f32 1.0, %v324_v37  ;;  %v751_v42 = vpop.eup %750  ;;  %v314_v9 = vadd.f32 1.1283791, %v313_v4  ;;  %v353_v10 = vmul.f32 %v352_v54, %v985_v33  ;;  %v298_v12 = vor.u32 1.1754944e-38, %v297_v62 }
  0xd7   :  { %v753_v46 = vpop.eup %752  ;;  %v247_v47 = vmul.f32 %v751_v42, %v245_v26  ;;  %v1017_v53 = vadd.f32 1.0, %v364_v45  ;;  %vm252_vm0 = vweird.f32 %v751_v42  ;;  %vm296_vm8 = vcmp.eq.f32.partialorder %v295_v3, 8.507059e+37 }
  0xd8   :  { %754 = vrcp.f32 %v325_v41  ;;  %v287_v50 = vmul.f32 %v753_v46, %v285_v28  ;;  %vm292_vm1 = vweird.f32 %v753_v46  ;;  %vm253_vm4 = vmor %vm251_vm2, %vm252_vm0  ;;  %v335_v15 = vand.u32 2147483647, %v325_v41 }
  0xd9   :  { %v248_v51 = vsub.f32 1.0, %v247_v47  ;;  %756 = vrcp.f32 %v1017_v53  ;;  %vm293_vm6 = vmor %vm291_vm5, %vm292_vm1  ;;  %v337_v20 = vand.u32 2147483648, %v325_v41  ;;  %v275_v25 = vmul.f32 %v274_v0, %v951_v61 }
  0xda   :  { %v288_v56 = vsub.f32 1.0, %v287_v50  ;;  %v315_v33 = vmul.f32 %v314_v9, %v970_v17  ;;  %v354_v26 = vadd.f32 1.1283791, %v353_v10  ;;  %vm331_vm9 = vweird.f32 %v325_v41 }
  0xdb   :  { %v249_v58 = vmul.f32 %v751_v42, %v248_v51  ;;  %vm336_vm10 = vcmp.eq.f32.partialorder %v335_v15, 8.507059e+37  ;;  %v338_v30 = vor.u32 1.1754944e-38, %v337_v20  ;;  %v375_v32 = vand.u32 2147483647, %v1017_v53 }
  0xdc   :  { %v289_v1 = vmul.f32 %v753_v46, %v288_v56  ;;  %v377_v34 = vand.u32 2147483648, %v1017_v53  ;;  %vm371_vm13 = vweird.f32 %v1017_v53  ;;  %v355_v17 = vmul.f32 %v354_v26, %v973_v19 }
  0xdd   :  { %v250_v2 = vadd.f32 %v751_v42, %v249_v58  ;;  %vm376_vm15 = vcmp.eq.f32.partialorder %v375_v32, 8.507059e+37  ;;  %v217_v47 = vmul.f32 0.5, %v962_v8  ;;  %v216_v19 = vmul.f32 0.5, %v945_v59 }
  0xde   :  { %v755_v5 = vpop.eup %754  ;;  %v290_v7 = vadd.f32 %v753_v46, %v289_v1  ;;  %v378_v40 = vor.u32 1.1754944e-38, %v377_v34  ;;  %v218_v4 = vmul.f32 0.5, %v965_v13 }
  0xdf   :  { %v327_v6 = vmul.f32 %v755_v5, %v325_v41  ;;  %v254_v11 = vsel %vm253_vm4, %v751_v42, %v250_v2  ;;  %v757_v18 = vpop.eup %756  ;;  %vm332_vm7 = vweird.f32 %v755_v5 }
  0xe0   :  { %v259_v60 = vsel %vm256_vm3, %v258_v29, %v254_v11  ;;  %v294_v16 = vsel %vm293_vm6, %v753_v46, %v290_v7  ;;  %v367_v24 = vmul.f32 %v757_v18, %v1017_v53  ;;  %vm333_vm11 = vmor %vm331_vm9, %vm332_vm7  ;;  %vm372_vm12 = vweird.f32 %v757_v18 }
  0xe1   :  { %v328_v14 = vsub.f32 1.0, %v327_v6  ;;  %v260_v21 = vmul.f32 %v259_v60, %v235_v63  ;;  %v299_v23 = vsel %vm296_vm8, %v298_v12, %v294_v16  ;;  %vm373_vm14 = vmor %vm371_vm13, %vm372_vm12  ;;  %v215_v46 = vmul.f32 0.5, %v943_v57  ;;  %v749_v57 = vld [vmem:[%s1047_s4] ss:$0 sm:$0xff] }
  0xe2   :  { %v368_v28 = vsub.f32 1.0, %v367_v24  ;;  %v300_v31 = vmul.f32 %v299_v23, %v275_v25 }
  0xe3   :  { %v329_v22 = vmul.f32 %v755_v5, %v328_v14  ;;  %v640_v35 = vclamps-f32 %v260_v21, 1.0 }
  0xe4   :  { %v369_v37 = vmul.f32 %v757_v18, %v368_v28  ;;  %v641_v43 = vclamps-f32 %v300_v31, 1.0 }
  0xe5   :  { %v330_v27 = vadd.f32 %v755_v5, %v329_v22  ;;  %v383_v42 = vadd.f32 1.0, %v640_v35 }
  0xe6   :  { %v370_v39 = vadd.f32 %v757_v18, %v369_v37  ;;  %v384_v53 = vadd.f32 1.0, %v641_v43 }
  0xe7   :  { %v334_v36 = vsel %vm333_vm11, %v755_v5, %v330_v27  ;;  %v387_v50 = vmul.f32 %v383_v42, %v215_v46 }
  0xe8   :  { %v339_v38 = vsel %vm336_vm10, %v338_v30, %v334_v36  ;;  %v374_v44 = vsel %vm373_vm14, %v757_v18, %v370_v39  ;;  %v388_v56 = vmul.f32 %v384_v53, %v216_v19 }
  0xe9   :  { %v340_v61 = vmul.f32 %v339_v38, %v315_v33  ;;  %v379_v45 = vsel %vm376_vm15, %v378_v40, %v374_v44 }
  0xea   :  { %v380_v49 = vmul.f32 %v379_v45, %v355_v17 }
  0xeb   :  { %v642_v41 = vclamps-f32 %v340_v61, 1.0 }
  0xec   :  { %v643_v52 = vclamps-f32 %v380_v49, 1.0 }
  0xed   :  { %v385_v48 = vadd.f32 1.0, %v642_v41 }
  0xee   :  { %v386_v55 = vadd.f32 1.0, %v643_v52 }
  0xef   :  { %v389_v51 = vmul.f32 %v385_v48, %v217_v47 }
  0xf0   :  { %v390_v58 = vmul.f32 %v386_v55, %v218_v4 }
  0xf1   :  { %v391_v54 = vpack.c.bf16 %v389_v51, %v387_v50 }
  0xf2   :  { %v392_v62 = vpack.c.bf16 %v390_v58, %v388_v56 }
  0xf3   :  { %533 = vmatmul.bf16.vlgmr.msra.gmra.mxu2 %v391_v54 }
  0xf4   :  { %547 = vmatmul.bf16.vlgmr.msra.gmra.mxu3 %v392_v62 }
 0x176   :  { %v534_v8 = vpop.f32.mrf.mxu2 }
 0x177   :  { %v535_v63 = vadd.f32 %v749_v57, %v534_v8  ;;  %v548_v0 = vpop.f32.mrf.mxu3 }
 0x179   :  { %v549_v1 = vadd.f32 %v548_v0, %v535_v63 }
 0x17b   :  { %553 = vst [vmem:[#allocation10] sm:$0xff] %v549_v1 }
 0x17e   :  { %v536_v5 = vpop.f32.mrf.mxu2 }
 0x17f   :  { %v537_v59 = vadd.f32 %v749_v57, %v536_v5  ;;  %v550_v13 = vpop.f32.mrf.mxu3 }
 0x181   :  { %v551_v2 = vadd.f32 %v550_v13, %v537_v59 }
 0x183   :  { %554 = vst [vmem:[#allocation10 + $0x8] sm:$0xff] %v551_v2 }
 0x184   :  { %567 = dma.vmem_to_hbm [thread:$0]  %s560_s16, 256, %s562_s19, [#allocation4], %s887_s26, %s887_s26, %s888_s27  }
 0x185   :  { %884 = dma.done.wait [#allocation4], 256  }
 0x186   :  { %885 = vsyncadd [#allocation4], 4294967040 }
 0x187   :  { %572 = vsyncpa [#allocation3], 1 }
 0x188   :  { %573 = vsyncpa [#allocation6], 1 }
 0x189   :  { %574 = vsyncpa [#allocation9], 1 }
 0x18a   :  { %575 = vsyncpa [#allocation4], 1 }

</bundles_post_ra>
